<compile_context>
chip_gen: v5e
topology: v5e:2x2
jax: 0.10.0
libtpu: 0.0.40
codegen_flags: <defaults>
</compile_context>

<pallas_src>
import jax
import jax.numpy as jnp
import numpy as np
from jax.experimental import pallas as pl
from jax.experimental.pallas import tpu as pltpu

J = 22                    # number of joints
NFEATS = J * 3            # 66 flattened joint features
FEET = (7, 8, 10, 11)
FC_THRESHOLD = 0.001
LANE = 128


def _joint_loss_kernel(std_ref, dmean_ref, wpos_ref, wvel_ref,
                       mot_ref, gt_ref, out_ref):
    std = std_ref[...]                           # (1, T, F)  broadcasts over batch
    mot = mot_ref[...]                           # (bblk, T, F)
    gt = gt_ref[...]                             # (bblk, T, F)
    F = mot.shape[-1]

    # pred_joints - gt_joints == (motion - gt) * std  (the mean cancels),
    # so the pred denorm is never materialized.
    diff = (mot - gt) * std                      # (bblk, T, F)
    diff_sq = diff * diff

    # --- full-joint MSE + root-position MSE: lane-reduce first, weight after.
    all_rowsum = jnp.sum(diff_sq, axis=-1, keepdims=True) * (1.0 / F)
    root_rowsum = jnp.sum(diff_sq[:, :, 0:3], axis=-1, keepdims=True) * (1.0 / 3.0)
    pos_part = jnp.sum((all_rowsum + root_rowsum) * wpos_ref[...])

    # --- frame-to-frame velocities (within each sequence; no cross-batch diffs).
    ddiff = diff[:, 1:, :] - diff[:, :-1, :]     # (bblk, T-1, F) = pred_vel - gt_vel
    gts = gt * std
    dgt = (gts[:, 1:, :] - gts[:, :-1, :]) + dmean_ref[...]   # gt_vel (mean via dmean)

    vel_rowsum = jnp.sum(ddiff * ddiff, axis=-1, keepdims=True) * (1.0 / F)

    # --- foot contact: per-foot squared gt-velocity norm via 3-lane slice sums
    # (squared-threshold compare avoids the sqrt; no matmul constant needed).
    thr2 = jnp.float32(FC_THRESHOLD * FC_THRESHOLD)
    fc_rowsum = jnp.zeros_like(vel_rowsum)
    for j in FEET:
        c0 = 3 * j
        dg = dgt[:, :, c0:c0 + 3]                # (bblk, T-1, 3) gt foot velocity
        dp = dg + ddiff[:, :, c0:c0 + 3]         # pred foot velocity
        sq = jnp.sum(dg * dg, axis=-1, keepdims=True)
        psq = jnp.sum(dp * dp, axis=-1, keepdims=True)
        fc_rowsum = fc_rowsum + jnp.where(sq <= thr2, psq, 0.0)
    fc_rowsum = fc_rowsum * (1.0 / (3.0 * len(FEET)))

    velfc_part = jnp.sum((vel_rowsum + fc_rowsum) * wvel_ref[...])

    total = pos_part + velfc_part
    # Lane-dense single (8, 128) store of this grid step's partial loss.
    out_ref[...] = jnp.full(out_ref.shape, total, dtype=out_ref.dtype)


def _pick_bblk(B: int, T: int) -> int:
    """Largest divisor of B that fits the VMEM budget and keeps nblk >= 2."""
    # VMEM footprint per sequence per pipelined buffer (rows pad to 8 sublanes,
    # lanes pad to 128 regardless of F=66).
    rows = ((T + 7) // 8) * 8
    per_seq = rows * LANE * 4
    # ~8 pipelined buffers (motion/gt/wpos/wvel double-buffered) plus ~8 full-size
    # body temporaries; keep well under v7x's 64 MiB physical / 32 MiB scoped VMEM.
    vmem_cap = max(1, (20 << 20) // (16 * per_seq))
    upper = vmem_cap
    if B >= 2:
        upper = min(upper, max(1, B // 2))       # >=2 grid steps -> 2nd TC on v7x
    upper = min(upper, B)
    best = 1
    for d in range(1, upper + 1):
        if B % d == 0:
            best = d
    return best


@jax.jit
def joint_loss(motion, gt, mask, data_mean, data_std):
    B, T, F = motion.shape
    f32 = jnp.float32
    motion = motion.astype(f32)
    gt = gt.astype(f32)

    # TODO(synk): general (non-prefix) boolean masks would need in-kernel frame
    # compaction (scalar-prefetched row indices + pl.Element row gather); masks
    # are assumed prefix-valid here so the raw arrays are streamed directly.
    counts = jnp.sum(mask, axis=1).astype(f32)                     # (B,)
    t_idx = jnp.arange(T, dtype=f32)[None, :]                      # (1, T)
    wpos = ((t_idx < counts[:, None]).astype(f32)
            / jnp.maximum(counts[:, None], 1.0))                   # guards n == 0
    tv = jnp.arange(T - 1, dtype=f32)[None, :]                     # (1, T-1)
    wvel = ((tv < counts[:, None] - 1.0).astype(f32)
            / jnp.maximum(counts[:, None] - 1.0, 1.0))             # guards n <= 1
    wpos = wpos[:, :, None]                                        # (B, T, 1)
    wvel = wvel[:, :, None]                                        # (B, T-1, 1)

    std = data_std[:T].astype(f32)[None]                           # (1, T, F) resident
    mean = data_mean[:T].astype(f32)
    dmean = (mean[1:] - mean[:-1])[None]                           # (1, T-1, F) resident

    bblk = _pick_bblk(B, T)
    nblk = B // bblk

    out = pl.pallas_call(
        _joint_loss_kernel,
        grid=(nblk,),
        in_specs=[
            pl.BlockSpec((1, T, F), lambda i: (0, 0, 0)),          # std (resident)
            pl.BlockSpec((1, T - 1, F), lambda i: (0, 0, 0)),      # dmean (resident)
            pl.BlockSpec((bblk, T, 1), lambda i: (i, 0, 0)),       # position weights
            pl.BlockSpec((bblk, T - 1, 1), lambda i: (i, 0, 0)),   # velocity weights
            pl.BlockSpec((bblk, T, F), lambda i: (i, 0, 0)),       # motion
            pl.BlockSpec((bblk, T, F), lambda i: (i, 0, 0)),       # gt
        ],
        out_specs=pl.BlockSpec((1, 8, LANE), lambda i: (i, 0, 0)),
        out_shape=jax.ShapeDtypeStruct((nblk, 8, LANE), jnp.float32),
        compiler_params=pltpu.CompilerParams(
            dimension_semantics=("parallel",),   # per-block partials -> 2nd TC on v7x
            vmem_limit_bytes=32 * 1024 * 1024),
    )(std, dmean, wpos, wvel, motion, gt)

    return jnp.sum(out[:, 0, 0])


# ----------------------- pure numpy reference -------------------------------
def _ref_joint_loss(motion, gt, mask, data_mean, data_std):
    motion = np.asarray(motion); gt = np.asarray(gt); mask = np.asarray(mask)
    data_mean = np.asarray(data_mean); data_std = np.asarray(data_std)
    B = motion.shape[0]
    total = np.float32(0.0)
    for i in range(B):
        m = motion[i][mask[i]]
        g = gt[i][mask[i]]
        Ti = m.shape[0]
        p = (m * data_std[:Ti] + data_mean[:Ti]).reshape(Ti, J, 3)
        q = (g * data_std[:Ti] + data_mean[:Ti]).reshape(Ti, J, 3)
        root = np.mean((p[:, 0, :] - q[:, 0, :]) ** 2)
        vel = np.mean(((p[1:] - p[:-1]) - (q[1:] - q[:-1])) ** 2)
        pv = p[1:, FEET, :] - p[:-1, FEET, :]
        gv = q[1:, FEET, :] - q[:-1, FEET, :]
        contact = (np.linalg.norm(gv, axis=2) <= FC_THRESHOLD)[:, :, None]
        mp = np.where(np.broadcast_to(contact, pv.shape), pv, 0.0)
        fc = np.mean(mp ** 2)
        full = np.mean((p - q) ** 2)
        total += np.float32(root + vel + fc + full)
    return total


if __name__ == "__main__":
    B, T = 2, 16
    key = jax.random.PRNGKey(0)
    k1, k2 = jax.random.split(key, 2)

    motion = jax.random.normal(k1, (B, T, NFEATS), dtype=jnp.float32)
    gt = jax.random.normal(k2, (B, T, NFEATS), dtype=jnp.float32)

    # Force some zero ground-truth foot velocities so the foot-contact branch
    # is exercised: duplicate frame 4 into frame 5 of gt.
    gt = gt.at[:, 5, :].set(gt[:, 4, :])

    # Deterministic normalization buffers, shaped (T, F) as the module's
    # denorm slicing implies.
    feat_mean = 0.1 * jnp.sin(jnp.arange(NFEATS, dtype=jnp.float32))
    feat_std = 0.5 + 0.05 * jnp.cos(jnp.arange(NFEATS, dtype=jnp.float32))
    data_mean = jnp.tile(feat_mean[None, :], (T, 1))
    data_std = jnp.tile(feat_std[None, :], (T, 1))

    # Prefix-style validity masks with different lengths per batch item.
    lengths = jnp.array([16, 12], dtype=jnp.int32)
    mask = jnp.arange(T)[None, :] < lengths[:, None]            # (B, T) bool

    loss = joint_loss(motion, gt, mask, data_mean, data_std)
    loss = jax.block_until_ready(loss)

    ref = _ref_joint_loss(motion, gt, mask, data_mean, data_std)
    np.testing.assert_allclose(np.asarray(loss), ref, rtol=1e-4, atol=1e-4)

    print("KERNEL_OK")
</pallas_src>

<mosaic_0001>
module attributes {stable_mosaic.version = 11 : i64} {
  func.func @_joint_loss_kernel(%arg0: i32, %arg1: memref<1x16x66xf32, #tpu.memory_space<vmem>>, %arg2: memref<1x15x66xf32, #tpu.memory_space<vmem>>, %arg3: memref<1x16x1xf32, #tpu.memory_space<vmem>>, %arg4: memref<1x15x1xf32, #tpu.memory_space<vmem>>, %arg5: memref<1x16x66xf32, #tpu.memory_space<vmem>>, %arg6: memref<1x16x66xf32, #tpu.memory_space<vmem>>, %arg7: memref<1x8x128xf32, #tpu.memory_space<vmem>>) attributes {dimension_semantics = [#tpu.dimension_semantics<parallel>], iteration_bounds = array<i64: 2>, scalar_prefetch = 0 : i64, scratch_operands = 0 : i64, tpu.core_type = #tpu.core_type<tc>, window_params = [{pipeline_mode = #tpu.pipeline_mode<synchronous>, transform_indices = @transform_0, window_bounds = array<i64: 1, 16, 66>}, {pipeline_mode = #tpu.pipeline_mode<synchronous>, transform_indices = @transform_1, window_bounds = array<i64: 1, 15, 66>}, {transform_indices = @transform_2, window_bounds = array<i64: 1, 16, 1>}, {transform_indices = @transform_3, window_bounds = array<i64: 1, 15, 1>}, {transform_indices = @transform_4, window_bounds = array<i64: 1, 16, 66>}, {transform_indices = @transform_5, window_bounds = array<i64: 1, 16, 66>}, {transform_indices = @transform_6, window_bounds = array<i64: 1, 8, 128>}]} {
    %c0 = arith.constant 0 : index
    %c0_0 = arith.constant 0 : index
    %c0_1 = arith.constant 0 : index
    %0 = vector.load %arg1[%c0, %c0_0, %c0_1] : memref<1x16x66xf32, #tpu.memory_space<vmem>>, vector<1x16x66xf32>
    %c0_2 = arith.constant 0 : index
    %c0_3 = arith.constant 0 : index
    %c0_4 = arith.constant 0 : index
    %1 = vector.load %arg5[%c0_2, %c0_3, %c0_4] : memref<1x16x66xf32, #tpu.memory_space<vmem>>, vector<1x16x66xf32>
    %c0_5 = arith.constant 0 : index
    %c0_6 = arith.constant 0 : index
    %c0_7 = arith.constant 0 : index
    %2 = vector.load %arg6[%c0_5, %c0_6, %c0_7] : memref<1x16x66xf32, #tpu.memory_space<vmem>>, vector<1x16x66xf32>
    %3 = arith.subf %1, %2 : vector<1x16x66xf32>
    %4 = arith.mulf %3, %0 : vector<1x16x66xf32>
    %5 = arith.mulf %4, %4 : vector<1x16x66xf32>
    %cst = arith.constant dense<0.000000e+00> : vector<1x16xf32>
    %6 = vector.multi_reduction <add>, %5, %cst [2] : vector<1x16x66xf32> to vector<1x16xf32>
    %7 = vector.shape_cast %6 : vector<1x16xf32> to vector<1x16x1xf32>
    %cst_8 = arith.constant 0.0151515156 : f32
    %8 = vector.broadcast %cst_8 : f32 to vector<1x16x1xf32>
    %9 = arith.mulf %7, %8 : vector<1x16x1xf32>
    %10 = vector.extract_strided_slice %5 {offsets = [0, 0, 0], sizes = [1, 16, 3], strides = [1, 1, 1]} : vector<1x16x66xf32> to vector<1x16x3xf32>
    %cst_9 = arith.constant dense<0.000000e+00> : vector<1x16xf32>
    %11 = vector.multi_reduction <add>, %10, %cst_9 [2] : vector<1x16x3xf32> to vector<1x16xf32>
    %12 = vector.shape_cast %11 : vector<1x16xf32> to vector<1x16x1xf32>
    %cst_10 = arith.constant 0.333333343 : f32
    %13 = vector.broadcast %cst_10 : f32 to vector<1x16x1xf32>
    %14 = arith.mulf %12, %13 : vector<1x16x1xf32>
    %15 = arith.addf %9, %14 : vector<1x16x1xf32>
    %c0_11 = arith.constant 0 : index
    %c0_12 = arith.constant 0 : index
    %c0_13 = arith.constant 0 : index
    %16 = vector.load %arg3[%c0_11, %c0_12, %c0_13] : memref<1x16x1xf32, #tpu.memory_space<vmem>>, vector<1x16x1xf32>
    %17 = arith.mulf %15, %16 : vector<1x16x1xf32>
    %18 = vector.shape_cast %17 : vector<1x16x1xf32> to vector<1x1x16x1xf32>
    %cst_14 = arith.constant dense<0.000000e+00> : vector<1xf32>
    %19 = vector.multi_reduction <add>, %18, %cst_14 [1, 2, 3] : vector<1x1x16x1xf32> to vector<1xf32>
    %20 = vector.shape_cast %19 : vector<1xf32> to vector<1x1x1x1xf32>
    %21 = vector.extract %20[0, 0, 0, 0] : f32 from vector<1x1x1x1xf32>
    %22 = vector.extract_strided_slice %4 {offsets = [0, 1, 0], sizes = [1, 15, 66], strides = [1, 1, 1]} : vector<1x16x66xf32> to vector<1x15x66xf32>
    %23 = vector.extract_strided_slice %4 {offsets = [0, 0, 0], sizes = [1, 15, 66], strides = [1, 1, 1]} : vector<1x16x66xf32> to vector<1x15x66xf32>
    %24 = arith.subf %22, %23 : vector<1x15x66xf32>
    %25 = arith.mulf %2, %0 : vector<1x16x66xf32>
    %26 = vector.extract_strided_slice %25 {offsets = [0, 1, 0], sizes = [1, 15, 66], strides = [1, 1, 1]} : vector<1x16x66xf32> to vector<1x15x66xf32>
    %27 = vector.extract_strided_slice %25 {offsets = [0, 0, 0], sizes = [1, 15, 66], strides = [1, 1, 1]} : vector<1x16x66xf32> to vector<1x15x66xf32>
    %28 = arith.subf %26, %27 : vector<1x15x66xf32>
    %c0_15 = arith.constant 0 : index
    %c0_16 = arith.constant 0 : index
    %c0_17 = arith.constant 0 : index
    %29 = vector.load %arg2[%c0_15, %c0_16, %c0_17] : memref<1x15x66xf32, #tpu.memory_space<vmem>>, vector<1x15x66xf32>
    %30 = arith.addf %28, %29 : vector<1x15x66xf32>
    %31 = arith.mulf %24, %24 : vector<1x15x66xf32>
    %cst_18 = arith.constant dense<0.000000e+00> : vector<1x15xf32>
    %32 = vector.multi_reduction <add>, %31, %cst_18 [2] : vector<1x15x66xf32> to vector<1x15xf32>
    %33 = vector.shape_cast %32 : vector<1x15xf32> to vector<1x15x1xf32>
    %cst_19 = arith.constant 0.0151515156 : f32
    %34 = vector.broadcast %cst_19 : f32 to vector<1x15x1xf32>
    %35 = arith.mulf %33, %34 : vector<1x15x1xf32>
    %cst_20 = arith.constant 0.000000e+00 : f32
    %36 = vector.broadcast %cst_20 : f32 to vector<1x15x1xf32>
    %37 = vector.extract_strided_slice %30 {offsets = [0, 0, 21], sizes = [1, 15, 3], strides = [1, 1, 1]} : vector<1x15x66xf32> to vector<1x15x3xf32>
    %38 = vector.extract_strided_slice %24 {offsets = [0, 0, 21], sizes = [1, 15, 3], strides = [1, 1, 1]} : vector<1x15x66xf32> to vector<1x15x3xf32>
    %39 = arith.addf %37, %38 : vector<1x15x3xf32>
    %40 = arith.mulf %37, %37 : vector<1x15x3xf32>
    %cst_21 = arith.constant dense<0.000000e+00> : vector<1x15xf32>
    %41 = vector.multi_reduction <add>, %40, %cst_21 [2] : vector<1x15x3xf32> to vector<1x15xf32>
    %42 = vector.shape_cast %41 : vector<1x15xf32> to vector<1x15x1xf32>
    %43 = arith.mulf %39, %39 : vector<1x15x3xf32>
    %cst_22 = arith.constant dense<0.000000e+00> : vector<1x15xf32>
    %44 = vector.multi_reduction <add>, %43, %cst_22 [2] : vector<1x15x3xf32> to vector<1x15xf32>
    %45 = vector.shape_cast %44 : vector<1x15xf32> to vector<1x15x1xf32>
    %cst_23 = arith.constant 9.99999997E-7 : f32
    %46 = vector.broadcast %cst_23 : f32 to vector<1x15x1xf32>
    %47 = arith.cmpf ole, %42, %46 : vector<1x15x1xf32>
    %cst_24 = arith.constant 0.000000e+00 : f32
    %48 = vector.broadcast %cst_24 : f32 to vector<1x15x1xf32>
    %49 = arith.select %47, %45, %48 : vector<1x15x1xi1>, vector<1x15x1xf32>
    %50 = arith.addf %36, %49 : vector<1x15x1xf32>
    %51 = vector.extract_strided_slice %30 {offsets = [0, 0, 24], sizes = [1, 15, 3], strides = [1, 1, 1]} : vector<1x15x66xf32> to vector<1x15x3xf32>
    %52 = vector.extract_strided_slice %24 {offsets = [0, 0, 24], sizes = [1, 15, 3], strides = [1, 1, 1]} : vector<1x15x66xf32> to vector<1x15x3xf32>
    %53 = arith.addf %51, %52 : vector<1x15x3xf32>
    %54 = arith.mulf %51, %51 : vector<1x15x3xf32>
    %cst_25 = arith.constant dense<0.000000e+00> : vector<1x15xf32>
    %55 = vector.multi_reduction <add>, %54, %cst_25 [2] : vector<1x15x3xf32> to vector<1x15xf32>
    %56 = vector.shape_cast %55 : vector<1x15xf32> to vector<1x15x1xf32>
    %57 = arith.mulf %53, %53 : vector<1x15x3xf32>
    %cst_26 = arith.constant dense<0.000000e+00> : vector<1x15xf32>
    %58 = vector.multi_reduction <add>, %57, %cst_26 [2] : vector<1x15x3xf32> to vector<1x15xf32>
    %59 = vector.shape_cast %58 : vector<1x15xf32> to vector<1x15x1xf32>
    %cst_27 = arith.constant 9.99999997E-7 : f32
    %60 = vector.broadcast %cst_27 : f32 to vector<1x15x1xf32>
    %61 = arith.cmpf ole, %56, %60 : vector<1x15x1xf32>
    %cst_28 = arith.constant 0.000000e+00 : f32
    %62 = vector.broadcast %cst_28 : f32 to vector<1x15x1xf32>
    %63 = arith.select %61, %59, %62 : vector<1x15x1xi1>, vector<1x15x1xf32>
    %64 = arith.addf %50, %63 : vector<1x15x1xf32>
    %65 = vector.extract_strided_slice %30 {offsets = [0, 0, 30], sizes = [1, 15, 3], strides = [1, 1, 1]} : vector<1x15x66xf32> to vector<1x15x3xf32>
    %66 = vector.extract_strided_slice %24 {offsets = [0, 0, 30], sizes = [1, 15, 3], strides = [1, 1, 1]} : vector<1x15x66xf32> to vector<1x15x3xf32>
    %67 = arith.addf %65, %66 : vector<1x15x3xf32>
    %68 = arith.mulf %65, %65 : vector<1x15x3xf32>
    %cst_29 = arith.constant dense<0.000000e+00> : vector<1x15xf32>
    %69 = vector.multi_reduction <add>, %68, %cst_29 [2] : vector<1x15x3xf32> to vector<1x15xf32>
    %70 = vector.shape_cast %69 : vector<1x15xf32> to vector<1x15x1xf32>
    %71 = arith.mulf %67, %67 : vector<1x15x3xf32>
    %cst_30 = arith.constant dense<0.000000e+00> : vector<1x15xf32>
    %72 = vector.multi_reduction <add>, %71, %cst_30 [2] : vector<1x15x3xf32> to vector<1x15xf32>
    %73 = vector.shape_cast %72 : vector<1x15xf32> to vector<1x15x1xf32>
    %cst_31 = arith.constant 9.99999997E-7 : f32
    %74 = vector.broadcast %cst_31 : f32 to vector<1x15x1xf32>
    %75 = arith.cmpf ole, %70, %74 : vector<1x15x1xf32>
    %cst_32 = arith.constant 0.000000e+00 : f32
    %76 = vector.broadcast %cst_32 : f32 to vector<1x15x1xf32>
    %77 = arith.select %75, %73, %76 : vector<1x15x1xi1>, vector<1x15x1xf32>
    %78 = arith.addf %64, %77 : vector<1x15x1xf32>
    %79 = vector.extract_strided_slice %30 {offsets = [0, 0, 33], sizes = [1, 15, 3], strides = [1, 1, 1]} : vector<1x15x66xf32> to vector<1x15x3xf32>
    %80 = vector.extract_strided_slice %24 {offsets = [0, 0, 33], sizes = [1, 15, 3], strides = [1, 1, 1]} : vector<1x15x66xf32> to vector<1x15x3xf32>
    %81 = arith.addf %79, %80 : vector<1x15x3xf32>
    %82 = arith.mulf %79, %79 : vector<1x15x3xf32>
    %cst_33 = arith.constant dense<0.000000e+00> : vector<1x15xf32>
    %83 = vector.multi_reduction <add>, %82, %cst_33 [2] : vector<1x15x3xf32> to vector<1x15xf32>
    %84 = vector.shape_cast %83 : vector<1x15xf32> to vector<1x15x1xf32>
    %85 = arith.mulf %81, %81 : vector<1x15x3xf32>
    %cst_34 = arith.constant dense<0.000000e+00> : vector<1x15xf32>
    %86 = vector.multi_reduction <add>, %85, %cst_34 [2] : vector<1x15x3xf32> to vector<1x15xf32>
    %87 = vector.shape_cast %86 : vector<1x15xf32> to vector<1x15x1xf32>
    %cst_35 = arith.constant 9.99999997E-7 : f32
    %88 = vector.broadcast %cst_35 : f32 to vector<1x15x1xf32>
    %89 = arith.cmpf ole, %84, %88 : vector<1x15x1xf32>
    %cst_36 = arith.constant 0.000000e+00 : f32
    %90 = vector.broadcast %cst_36 : f32 to vector<1x15x1xf32>
    %91 = arith.select %89, %87, %90 : vector<1x15x1xi1>, vector<1x15x1xf32>
    %92 = arith.addf %78, %91 : vector<1x15x1xf32>
    %cst_37 = arith.constant 0.0833333358 : f32
    %93 = vector.broadcast %cst_37 : f32 to vector<1x15x1xf32>
    %94 = arith.mulf %92, %93 : vector<1x15x1xf32>
    %95 = arith.addf %35, %94 : vector<1x15x1xf32>
    %c0_38 = arith.constant 0 : index
    %c0_39 = arith.constant 0 : index
    %c0_40 = arith.constant 0 : index
    %96 = vector.load %arg4[%c0_38, %c0_39, %c0_40] : memref<1x15x1xf32, #tpu.memory_space<vmem>>, vector<1x15x1xf32>
    %97 = arith.mulf %95, %96 : vector<1x15x1xf32>
    %98 = vector.shape_cast %97 : vector<1x15x1xf32> to vector<1x1x15x1xf32>
    %cst_41 = arith.constant dense<0.000000e+00> : vector<1xf32>
    %99 = vector.multi_reduction <add>, %98, %cst_41 [1, 2, 3] : vector<1x1x15x1xf32> to vector<1xf32>
    %100 = vector.shape_cast %99 : vector<1xf32> to vector<1x1x1x1xf32>
    %101 = vector.extract %100[0, 0, 0, 0] : f32 from vector<1x1x1x1xf32>
    %102 = arith.addf %21, %101 : f32
    %103 = vector.broadcast %102 : f32 to vector<1x8x128xf32>
    %c0_42 = arith.constant 0 : index
    %c0_43 = arith.constant 0 : index
    %c0_44 = arith.constant 0 : index
    %104 = vector.load %arg7[%c0_42, %c0_43, %c0_44] : memref<1x8x128xf32, #tpu.memory_space<vmem>>, vector<1x8x128xf32>
    tpu.vector_store %arg7[%c0_42, %c0_43, %c0_44], %103 {strides = array<i32>} : memref<1x8x128xf32, #tpu.memory_space<vmem>>, vector<1x8x128xf32>,
    return
  }
  func.func @transform_0(%arg0: i32) -> (i32, i32, i32) {
    %c0_i32 = arith.constant 0 : i32
    %c0_i32_0 = arith.constant 0 : i32
    %c0_i32_1 = arith.constant 0 : i32
    %c0_i32_2 = arith.constant 0 : i32
    return %c0_i32, %c0_i32_0, %c0_i32_1 : i32, i32, i32
  }
  func.func @transform_1(%arg0: i32) -> (i32, i32, i32) {
    %c0_i32 = arith.constant 0 : i32
    %c0_i32_0 = arith.constant 0 : i32
    %c0_i32_1 = arith.constant 0 : i32
    %c0_i32_2 = arith.constant 0 : i32
    return %c0_i32, %c0_i32_0, %c0_i32_1 : i32, i32, i32
  }
  func.func @transform_2(%arg0: i32) -> (i32, i32, i32) {
    %c0_i32 = arith.constant 0 : i32
    %c0_i32_0 = arith.constant 0 : i32
    %c0_i32_1 = arith.constant 0 : i32
    return %arg0, %c0_i32, %c0_i32_0 : i32, i32, i32
  }
  func.func @transform_3(%arg0: i32) -> (i32, i32, i32) {
    %c0_i32 = arith.constant 0 : i32
    %c0_i32_0 = arith.constant 0 : i32
    %c0_i32_1 = arith.constant 0 : i32
    return %arg0, %c0_i32, %c0_i32_0 : i32, i32, i32
  }
  func.func @transform_4(%arg0: i32) -> (i32, i32, i32) {
    %c0_i32 = arith.constant 0 : i32
    %c0_i32_0 = arith.constant 0 : i32
    %c0_i32_1 = arith.constant 0 : i32
    return %arg0, %c0_i32, %c0_i32_0 : i32, i32, i32
  }
  func.func @transform_5(%arg0: i32) -> (i32, i32, i32) {
    %c0_i32 = arith.constant 0 : i32
    %c0_i32_0 = arith.constant 0 : i32
    %c0_i32_1 = arith.constant 0 : i32
    return %arg0, %c0_i32, %c0_i32_0 : i32, i32, i32
  }
  func.func @transform_6(%arg0: i32) -> (i32, i32, i32) {
    %c0_i32 = arith.constant 0 : i32
    %c0_i32_0 = arith.constant 0 : i32
    %c0_i32_1 = arith.constant 0 : i32
    return %arg0, %c0_i32, %c0_i32_0 : i32, i32, i32
  }
}

</mosaic_0001>

<bundles_post_ra>
// kernel: joint_loss.1
= control target key start
LH: loop header
LB: loop body
LE: loop exit
PB: predicated region body
PF: predicated region fallthrough
CT: control target
= control target key end

     0   :  { %s744_s21 = smov 0   ;;  %s826_s0 = inlined_call_operand.vmem [shape: f32[1,16,66], index: 0, kind: input, shape index: {}]   ;;  %s827_s1 = inlined_call_operand.vmem [shape: f32[1,15,66], index: 1, kind: input, shape index: {}]   ;;  %s828_s2 = inlined_call_operand.vmem [shape: f32[2,16,1], index: 2, kind: input, shape index: {}]   ;;  %s829_s3 = inlined_call_operand.vmem [shape: f32[2,15,1], index: 3, kind: input, shape index: {}]   ;;  %s830_s4 = inlined_call_operand.vmem [shape: f32[2,16,66], index: 4, kind: input, shape index: {}]   ;;  %s831_s5 = inlined_call_operand.vmem [shape: f32[2,16,66], index: 5, kind: input, shape index: {}]   ;;  %s832_s6 = inlined_call_operand.vmem [shape: f32[2,8,128], index: 6, kind: output, shape index: {}]  }
   0x1 LB: > { %s661_s22 = sadd.s32 4294967295, %s703_s21   ;;  %p665_p0 = scmp.ge.s32.totalorder %s703_s21, 1  ;;  %s703_s21 = sphi %s744_s21, %s16_s21  }
   0x2   : > { %p242_p1 = scmp.lt.s32.totalorder %s703_s21, 3 }
   0x4   : > { %p243_p2 = pnand %p665_p0, %p242_p1 }
   0x5   : > { %p286_p3 = scmp.lt.s32.totalorder (!%p243_p2), %s661_s22, 1  ;;  %s705_s14 = smov (!%p243_p2), 107  }
   0x6   : > { %246 = sbr.rel (%p243_p2) target bundleno = 533 (0x215), region = 44  ;;  %s706_s15 = smov (!%p243_p2), 104  }
   0x7   : > { %s707_s16 = smov (!%p243_p2), 98   ;;  %s708_s17 = smov (!%p243_p2), 95  }
   0xb   : > { %s834_s22 = smov (!%p286_p3, %s661_s22), 1  ;;  %v310_v0 = vld [vmem:[%s826_s0] sm:$0xff]  ;;  %v311_v5 = vld [vmem:[%s826_s0 + $0x8] sm:$0xff]  ;;  %vm331_vm0 = vcmask 23552   ;;  %vm322_vm1 = vcmask 539648   ;;  %vm361_vm2 = vcmask 1040384  }
   0xc   : > { %s755_s23 = sshll.u32 %s834_s22, 4  ;;  %vm393_vm3 = vcmask 539649   ;;  %v381_v27 = vld [vmem:[%s827_s1 + $0x8] sm:$0x7f]  ;;  %v380_v29 = vld [vmem:[%s827_s1] sm:$0xff]  ;;  %vm414_vm4 = vcmask 23553  }
   0xd   : > { %s300_s26 = scalar_lea.vmem %s830_s4, %s755_s23  ;;  %s305_s29 = scalar_lea.vmem %s831_s5, %s755_s23  ;;  %v385_v31 = vrot.slane %v381_v27, 7  ;;  %v384_v33 = vrot.slane %v380_v29, 7  ;;  %vm346_vm5 = vcmask 7168   ;;  %vm550_vm14 = vcmask 1046528  }
   0xe   : > { %v312_v1 = vld [vmem:[%s300_s26] sm:$0xff]  ;;  %v313_v3 = vld [vmem:[%s300_s26 + $0x8] sm:$0xff]  ;;  %s290_s20 = scalar_lea.vmem %s828_s2, %s755_s23  ;;  %s295_s26 = scalar_lea.vmem %s829_s3, %s755_s23  ;;  %vm557_vm15 = vcmask 6144  }
   0xf   : > { %v314_v2 = vld [vmem:[%s305_s29] sm:$0xff]  ;;  %v315_v6 = vld [vmem:[%s305_s29 + $0x8] sm:$0xff]  ;;  %v386_v35 = vsel %vm361_vm2, %v384_v33, %v385_v31  ;;  %s674_s23 = sshll.u32 %s834_s22, 3 }
  0x10   : > { %v316_v4 = vsub.f32 %v312_v1, %v314_v2  ;;  %v317_v7 = vsub.f32 %v313_v3, %v315_v6  ;;  %v370_v21 = vmul.f32 %v315_v6, %v311_v5  ;;  %v369_v24 = vmul.f32 %v314_v2, %v310_v0  ;;  %s309_s7 = scalar_lea.vmem %s832_s6, %s674_s23 }
  0x12   : > { %v318_v8 = vmul.f32 %v316_v4, %v310_v0  ;;  %v319_v9 = vmul.f32 %v317_v7, %v311_v5  ;;  %v374_v25 = vrot.slane %v370_v21, 7  ;;  %v373_v28 = vrot.slane %v369_v24, 7 }
  0x14   : > { %v320_v10 = vmul.f32 %v318_v8, %v318_v8  ;;  %v362_v11 = vrot.slane %v318_v8, 7  ;;  %v363_v12 = vrot.slane %v319_v9, 7  ;;  %v321_v16 = vmul.f32 %v319_v9, %v319_v9 }
  0x15   : > { %v375_v30 = vsel %vm361_vm2, %v373_v28, %v374_v25  ;;  %v378_v37 = vsub.f32 %v369_v24, %v373_v28 }
  0x16   : > { %v332_v13 = vsel %vm331_vm0, %v320_v10, 0.0  ;;  %v323_v14 = vsel %vm322_vm1, %v320_v10, 0.0  ;;  %v367_v15 = vsub.f32 %v318_v8, %v362_v11  ;;  %v364_v18 = vsel %vm361_vm2, %v362_v11, %v363_v12 }
  0x17   : > { %333 = vadd.xlane.f32.xlu1 %v332_v13  ;;  %324 = vadd.xlane.f32.xlu0 %v323_v14  ;;  %v335_v20 = vsel %vm331_vm0, %v321_v16, 0.0  ;;  %v326_v22 = vsel %vm322_vm1, %v321_v16, 0.0  ;;  %v368_v23 = vsub.f32 %v319_v9, %v364_v18  ;;  %v379_v34 = vsub.f32 %v370_v21, %v375_v30  ;;  %v343_v13 = vld [vmem:[%s290_s20 + $0x8] sm:$0xff]  ;;  %v342_v16 = vld [vmem:[%s290_s20] sm:$0xff] }
  0x18   : > { %v391_v17 = vmul.f32 %v367_v15, %v367_v15  ;;  %v389_v39 = vadd.f32 %v384_v33, %v378_v37 }
  0x19   : > { %v392_v26 = vmul.f32 %v368_v23, %v368_v23  ;;  %v390_v36 = vadd.f32 %v386_v35, %v379_v34 }
  0x1a   : > { %v394_v19 = vsel %vm393_vm3, %v391_v17, 0.0  ;;  %v404_v40 = vmul.f32 %v389_v39, %v389_v39  ;;  %v402_v41 = vadd.f32 %v389_v39, %v367_v15 }
  0x1b   : > { %395 = vadd.xlane.f32.xlu2 %v394_v19  ;;  %v397_v32 = vsel %vm322_vm1, %v392_v26, 0.0  ;;  %v405_v38 = vmul.f32 %v390_v36, %v390_v36  ;;  %v403_v42 = vadd.f32 %v390_v36, %v368_v23 }
  0x1c   : > { %v421_v43 = vmul.f32 %v402_v41, %v402_v41 }
  0x1d   : > { %v422_v44 = vmul.f32 %v403_v42, %v403_v42 }
  0x1f   : > { %336 = vadd.xlane.f32.xlu1 %v335_v20  ;;  %327 = vadd.xlane.f32.xlu0 %v326_v22 }
  0x27   : > { %398 = vadd.xlane.f32.xlu0 %v397_v32 }
  0x33   : > { %410 = vrot.lane.b32.xlu2 %v405_v38, %s705_s14 }
  0x38   : > { %408 = vrot.lane.b32.xlu1 %v404_v40, %s705_s14 }
  0x3b   : > { %443 = vrot.lane.b32.xlu0 %v404_v40, %s706_s15  ;;  %445 = vrot.lane.b32.xlu2 %v405_v38, %s706_s15 }
  0x40   : > { %425 = vrot.lane.b32.xlu1 %v421_v43, %s705_s14 }
  0x43   : > { %457 = vrot.lane.b32.xlu0 %v422_v44, %s706_s15  ;;  %427 = vrot.lane.b32.xlu2 %v422_v44, %s705_s14 }
  0x48   : > { %455 = vrot.lane.b32.xlu1 %v421_v43, %s706_s15 }
  0x4b   : > { %485 = vrot.lane.b32.xlu0 %v421_v43, %s707_s16  ;;  %473 = vrot.lane.b32.xlu2 %v404_v40, %s707_s16 }
  0x50   : > { %475 = vrot.lane.b32.xlu1 %v405_v38, %s707_s16 }
  0x53   : > { %505 = vrot.lane.b32.xlu0 %v405_v38, %s708_s17  ;;  %487 = vrot.lane.b32.xlu2 %v422_v44, %s707_s16 }
  0x58   : > { %503 = vrot.lane.b32.xlu1 %v404_v40, %s708_s17 }
  0x5b   : > { %515 = vrot.lane.b32.xlu2 %v421_v43, %s708_s17 }
  0x60   : > { %517 = vrot.lane.b32.xlu1 %v422_v44, %s708_s17 }
  0x8a   : > { %v325_v46 = vpop.xlane.xlu0 %324  ;;  %v334_v48 = vpop.xlane.xlu1 %333 }
  0x8b   : > { %v338_v6 = vmul.f32 0.33333334, %v334_v48  ;;  %v329_v7 = vmul.f32 0.015151516, %v325_v46 }
  0x8d   : > { %v340_v14 = vadd.f32 %v338_v6, %v329_v7 }
  0x8e   : > { %v785_v45 = vpop.xlane.xlu2 %395 }
  0x8f   : > { %v344_v18 = vmul.f32 %v342_v16, %v340_v14  ;;  %v400_v6 = vmul.f32 0.015151516, %v785_v45 }
  0x91   : > { %v347_v22 = vsel %vm346_vm5, %v344_v18, 0.0 }
  0x92   : > { %v328_v49 = vpop.xlane.xlu0 %327  ;;  %v337_v52 = vpop.xlane.xlu1 %336 }
  0x93   : > { %v339_v2 = vmul.f32 0.33333334, %v337_v52  ;;  %v330_v3 = vmul.f32 0.015151516, %v328_v49 }
  0x95   : > { %v341_v10 = vadd.f32 %v339_v2, %v330_v3 }
  0x96   : > { %v411_v47 = vpop.permute.xlu2 %410 }
  0x97   : > { %v418_v61 = vsel %vm331_vm0, %v411_v47, 0.0  ;;  %v345_v17 = vmul.f32 %v343_v13, %v341_v10 }
  0x99   : > { %v348_v19 = vsel %vm346_vm5, %v345_v17, 0.0 }
  0x9a   : > { %v788_v53 = vpop.xlane.xlu0 %398  ;;  %v349_v24 = vadd.f32 %v348_v19, %v347_v22 }
  0x9b   : > { %v401_v14 = vmul.f32 0.015151516, %v788_v53 }
  0x9e   : > { %v446_v50 = vpop.permute.xlu2 %445 }
  0x9f   : > { %v452_v51 = vsel %vm331_vm0, %v446_v50, 0.0 }
  0xa0   : > { %453 = vadd.xlane.f32.xlu1 %v452_v51 }
  0xa6   : > { %v428_v54 = vpop.permute.xlu2 %427 }
  0xa7   : > { %v434_v4 = vsel %vm331_vm0, %v428_v54, 0.0 }
  0xaa   : > { %v409_v55 = vpop.permute.xlu1 %408 }
  0xab   : > { %v415_v56 = vsel %vm414_vm4, %v409_v55, 0.0 }
  0xac   : > { %416 = vadd.xlane.f32.xlu0 %v415_v56 }
  0xad   : > { %v444_v57 = vpop.permute.xlu0 %443 }
  0xae   : > { %v449_v58 = vsel %vm414_vm4, %v444_v57, 0.0  ;;  %v474_v59 = vpop.permute.xlu2 %473 }
  0xaf   : > { %450 = vadd.xlane.f32.xlu2 %v449_v58  ;;  %v479_v62 = vsel %vm414_vm4, %v474_v59, 0.0 }
  0xb2   : > { %v426_v60 = vpop.permute.xlu1 %425 }
  0xb3   : > { %v431_v1 = vsel %vm414_vm4, %v426_v60, 0.0 }
  0xb4   : > { %419 = vadd.xlane.f32.xlu0 %v418_v61 }
  0xb5   : > { %v458_v63 = vpop.permute.xlu0 %457 }
  0xb6   : > { %v488_v9 = vpop.permute.xlu2 %487  ;;  %v464_v21 = vsel %vm331_vm0, %v458_v63, 0.0 }
  0xb7   : > { %480 = vadd.xlane.f32.xlu2 %v479_v62  ;;  %v494_v15 = vsel %vm331_vm0, %v488_v9, 0.0 }
  0xba   : > { %v456_v0 = vpop.permute.xlu1 %455 }
  0xbb   : > { %v461_v20 = vsel %vm414_vm4, %v456_v0, 0.0 }
  0xbc   : > { %432 = vadd.xlane.f32.xlu0 %v431_v1  ;;  %v538_v1 = vld [vmem:[%s295_s26 + $0x8] sm:$0x7f] }
  0xbd   : > { %v486_v5 = vpop.permute.xlu0 %485  ;;  %v542_v10 = vrot.slane %v538_v1, 7 }
  0xbe   : > { %v491_v8 = vsel %vm414_vm4, %v486_v5, 0.0  ;;  %v516_v27 = vpop.permute.xlu2 %515 }
  0xbf   : > { %435 = vadd.xlane.f32.xlu2 %v434_v4  ;;  %v521_v29 = vsel %vm414_vm4, %v516_v27, 0.0  ;;  %v537_v4 = vld [vmem:[%s295_s26] sm:$0xff] }
  0xc2   : > { %v476_v11 = vpop.permute.xlu1 %475 }
  0xc3   : > { %v482_v12 = vsel %vm331_vm0, %v476_v11, 0.0  ;;  %v541_v11 = vrot.slane %v537_v4, 7 }
  0xc4   : > { %483 = vadd.xlane.f32.xlu1 %v482_v12  ;;  %492 = vadd.xlane.f32.xlu0 %v491_v8 }
  0xc5   : > { %v506_v25 = vpop.permute.xlu0 %505  ;;  %v543_v16 = vsel %vm361_vm2, %v541_v11, %v542_v10 }
  0xc6   : > { %v512_v28 = vsel %vm331_vm0, %v506_v25, 0.0 }
  0xc7   : > { %495 = vadd.xlane.f32.xlu2 %v494_v15 }
  0xca   : > { %v504_v23 = vpop.permute.xlu1 %503 }
  0xcb   : > { %v509_v26 = vsel %vm414_vm4, %v504_v23, 0.0 }
  0xcc   : > { %462 = vadd.xlane.f32.xlu1 %v461_v20  ;;  %465 = vadd.xlane.f32.xlu0 %v464_v21 }
  0xcf   : > { %350 = vadd.xlane.f32.xlu2 %v349_v24 }
  0xd2   : > { %v518_v30 = vpop.permute.xlu1 %517 }
  0xd3   : > { %v524_v31 = vsel %vm331_vm0, %v518_v30, 0.0 }
  0xd4   : > { %510 = vadd.xlane.f32.xlu1 %v509_v26  ;;  %513 = vadd.xlane.f32.xlu0 %v512_v28 }
  0xd7   : > { %522 = vadd.xlane.f32.xlu2 %v521_v29 }
  0xdc   : > { %525 = vadd.xlane.f32.xlu1 %v524_v31 }
 0x113   : > { %v454_v36 = vpop.xlane.xlu1 %453 }
 0x114   : > { %vm468_vm8 = vcmp.le.f32.partialorder %v454_v36, 1e-06 }
 0x11f   : > { %v417_v32 = vpop.xlane.xlu0 %416 }
 0x120   : > { %vm437_vm7 = vcmp.le.f32.partialorder %v417_v32, 1e-06 }
 0x122   : > { %v451_v33 = vpop.xlane.xlu2 %450 }
 0x123   : > { %vm467_vm6 = vcmp.le.f32.partialorder %v451_v33, 1e-06 }
 0x127   : > { %v420_v34 = vpop.xlane.xlu0 %419 }
 0x128   : > { %vm438_vm10 = vcmp.le.f32.partialorder %v420_v34, 1e-06 }
 0x12a   : > { %v481_v35 = vpop.xlane.xlu2 %480 }
 0x12b   : > { %vm497_vm9 = vcmp.le.f32.partialorder %v481_v35, 1e-06 }
 0x12f   : > { %v433_v37 = vpop.xlane.xlu0 %432 }
 0x130   : > { %v439_v48 = vsel %vm437_vm7, %v433_v37, 0.0 }
 0x132   : > { %v436_v38 = vpop.xlane.xlu2 %435 }
 0x133   : > { %v440_v57 = vsel %vm438_vm10, %v436_v38, 0.0 }
 0x137   : > { %v484_v39 = vpop.xlane.xlu1 %483  ;;  %v493_v40 = vpop.xlane.xlu0 %492 }
 0x138   : > { %v499_v55 = vsel %vm497_vm9, %v493_v40, 0.0  ;;  %vm498_vm12 = vcmp.le.f32.partialorder %v484_v39, 1e-06 }
 0x13a   : > { %v496_v41 = vpop.xlane.xlu2 %495 }
 0x13b   : > { %v500_v3 = vsel %vm498_vm12, %v496_v41, 0.0 }
 0x13f   : > { %v463_v42 = vpop.xlane.xlu1 %462  ;;  %v466_v43 = vpop.xlane.xlu0 %465 }
 0x140   : > { %v469_v46 = vsel %vm467_vm6, %v463_v42, 0.0  ;;  %v470_v54 = vsel %vm468_vm8, %v466_v43, 0.0 }
 0x141   : > { %v471_v50 = vadd.f32 %v469_v46, %v439_v48  ;;  %v472_v61 = vadd.f32 %v470_v54, %v440_v57 }
 0x142   : > { %v351_v44 = vpop.xlane.xlu2 %350 }
 0x143   : > { %v352_v47 = vrot.slane %v351_v44, 4  ;;  %v501_v58 = vadd.f32 %v499_v55, %v471_v50  ;;  %v502_v8 = vadd.f32 %v500_v3, %v472_v61 }
 0x145   : > { %v353_v49 = vadd.f32 %v352_v47, %v351_v44 }
 0x147   : > { %v354_v51 = vrot.slane %v353_v49, 2  ;;  %v511_v52 = vpop.xlane.xlu1 %510  ;;  %v514_v60 = vpop.xlane.xlu0 %513 }
 0x148   : > { %vm527_vm11 = vcmp.le.f32.partialorder %v511_v52, 1e-06  ;;  %vm528_vm13 = vcmp.le.f32.partialorder %v514_v60, 1e-06 }
 0x149   : > { %v355_v56 = vadd.f32 %v354_v51, %v353_v49 }
 0x14a   : > { %v523_v59 = vpop.xlane.xlu2 %522 }
 0x14b   : > { %v529_v62 = vsel %vm527_vm11, %v523_v59, 0.0  ;;  %v356_v63 = vrot.slane %v355_v56, 1 }
 0x14c   : > { %v531_v0 = vadd.f32 %v529_v62, %v501_v58 }
 0x14d   : > { %v357_v2 = vadd.f32 %v356_v63, %v355_v56 }
 0x14e   : > { %v533_v5 = vmul.f32 0.083333336, %v531_v0 }
 0x14f   : > { %v526_v7 = vpop.xlane.xlu1 %525  ;;  %681 = vpush %v357_v2 }
 0x150   : > { %v530_v9 = vsel %vm528_vm13, %v526_v7, 0.0  ;;  %v535_v12 = vadd.f32 %v533_v5, %v400_v6 }
 0x151   : > { %v532_v13 = vadd.f32 %v530_v9, %v502_v8 }
 0x152   : > { %v546_v17 = vmul.f32 %v541_v11, %v535_v12 }
 0x153   : > { %v534_v15 = vmul.f32 0.083333336, %v532_v13 }
 0x154   : > { %v551_v45 = vrot.slane %v546_v17, 1 }
 0x155   : > { %v536_v18 = vadd.f32 %v534_v15, %v401_v14 }
 0x157   : > { %v547_v19 = vmul.f32 %v543_v16, %v536_v18 }
 0x159   : > { %v552_v20 = vrot.slane %v547_v19, 1 }
 0x15b   : > { %v553_v21 = vsel %vm550_vm14, %v551_v45, %v552_v20  ;;  %v558_v22 = vsel %vm557_vm15, %v552_v20, 0.0 }
 0x15c   : > { %v556_v23 = vsel %vm346_vm5, %v553_v21, 0.0 }
 0x15d   : > { %v559_v24 = vadd.f32 %v558_v22, %v556_v23 }
 0x15f   : > { %560 = vadd.xlane.f32.xlu0 %v559_v24 }
 0x180   : > { %s682_s27 = spop %681 }
 0x1d2   : > { %v561_v25 = vpop.xlane.xlu0 %560 }
 0x1d3   : > { %v562_v26 = vrot.slane %v561_v25, 4 }
 0x1d5   : > { %v563_v53 = vadd.f32 %v562_v26, %v561_v25 }
 0x1d7   : > { %v564_v27 = vrot.slane %v563_v53, 2 }
 0x1d9   : > { %v565_v28 = vadd.f32 %v564_v27, %v563_v53 }
 0x1db   : > { %v566_v29 = vrot.slane %v565_v28, 1 }
 0x1dd   : > { %v567_v30 = vadd.f32 %v566_v29, %v565_v28 }
 0x1df   : > { %683 = vpush %v567_v30 }
 0x210   : > { %s684_s28 = spop %683 }
 0x211   : > { %s569_s8 = sadd.f32 %s684_s28, %s682_s27 }
 0x213   : > { %v570_v31 = vstv %s569_s8 }
 0x214   : > { %571 = vst [vmem:[%s309_s7] sm:$0xff] %v570_v31 }
 0x215 PF: > { %s16_s21 = sadd.s32 1, %s703_s21  }
 0x216   : > { %p13_p4 = scmp.ge.s32.totalorder %s16_s21, 4  }
 0x218   :  { %15 = sbr.rel (!%p13_p4) target bundleno = 1 (0x1), region = 83 }

</bundles_post_ra>
